<compile_context>
chip_gen: v7x
topology: tpu7x:2x2x1
jax: 0.10.0
libtpu: 0.0.40
codegen_flags: <defaults>
</compile_context>

<pallas_src>
import functools

import jax
import jax.numpy as jnp
from jax import lax
from jax.experimental import pallas as pl
from jax.experimental.pallas import tpu as pltpu


def _noise_con_loss_kernel(data_ref, next_ref, out_ref,
                           m_sc, l_sc, diag_sc, acc_sc,
                           *, batch, mask_rows, mask_cols):
    p = pl.program_id(0)           # row-group (megacore) axis      -- "parallel"
    i = pl.program_id(1)           # row-block axis                 -- "arbitrary"
    j = pl.program_id(2)           # column-block axis (online lse) -- "arbitrary"
    ni = pl.num_programs(1)
    nj = pl.num_programs(2)
    tm = data_ref.shape[0]
    tn = next_ref.shape[0]

    row0 = (p * ni + i) * tm       # first global row of this data tile
    col0 = j * tn                  # first global column (= next_data row) of this tile

    @pl.when(jnp.logical_and(i == 0, j == 0))
    def _():                       # new row group: reset the per-group accumulators
        acc_sc[...] = jnp.zeros_like(acc_sc)
        out_ref[...] = jnp.zeros_like(out_ref)

    @pl.when(j == 0)
    def _():                       # new row block: reset the online-logsumexp state
        m_sc[...] = jnp.full_like(m_sc, -jnp.inf)
        l_sc[...] = jnp.zeros_like(l_sc)
        diag_sc[...] = jnp.zeros_like(diag_sc)

    # (tm, tn) block of contrastive logits on the MXU, transpose-free (contract the
    # feature dim of both operands), f32 accumulation.  Inputs stay in their native
    # (bf16) dtype for the fast MXU path.
    logits = lax.dot_general(
        data_ref[...], next_ref[...],
        dimension_numbers=(((1,), (1,)), ((), ())),
        preferred_element_type=jnp.float32)                        # (tm, tn) f32

    cols = col0 + lax.broadcasted_iota(jnp.int32, (tm, tn), 1)
    if mask_cols:                  # zero-padded next_data rows: exclude from the lse
        logits = jnp.where(cols < batch, logits, -jnp.inf)

    # Online (flash-style) logsumexp across column blocks; state kept 2-D (tm, 1).
    m_prev = m_sc[...]
    m_new = jnp.maximum(m_prev, jnp.max(logits, axis=-1, keepdims=True))
    l_sc[...] = (jnp.exp(m_prev - m_new) * l_sc[...]
                 + jnp.sum(jnp.exp(logits - m_new), axis=-1, keepdims=True))
    m_sc[...] = m_new

    # Diagonal contrastive[r, r]: extracted from the already-computed logits in the
    # (single) column block that overlaps this row range -> numerically identical to
    # the values entering the logsumexp, and O(tm*tn) work once per row block.
    @pl.when(jnp.logical_and(col0 < row0 + tm, row0 < col0 + tn))
    def _():
        rows = row0 + lax.broadcasted_iota(jnp.int32, (tm, tn), 0)
        diag_sc[...] += jnp.sum(jnp.where(rows == cols, logits, 0.0),
                                axis=-1, keepdims=True)

    @pl.when(j == nj - 1)
    def _():                       # row block done: fold (lse - diag) into group acc
        per_row = m_sc[...] + jnp.log(l_sc[...]) - diag_sc[...]
        if mask_rows:              # zero-padded data rows contribute nothing
            rr = row0 + lax.broadcasted_iota(jnp.int32, (tm, 1), 0)
            per_row = jnp.where(rr < batch, per_row, 0.0)
        acc_sc[...] += per_row

    @pl.when(jnp.logical_and(i == ni - 1, j == nj - 1))
    def _():                       # row group done: single reduce into lane-dense tile
        out_ref[...] = jnp.sum(acc_sc[...]) + jnp.zeros_like(out_ref)


def _round_up(x, m):
    return ((x + m - 1) // m) * m


def _vmem_budget_bytes():
    """~75% of physical VMEM (~48 MiB on v7x, ~96 MiB on v5e/v6e)."""
    cap = 64 << 20
    try:
        cap = int(getattr(pltpu.get_tpu_info(), "vmem_capacity_bytes", cap)) or cap
    except Exception:
        pass
    return int(cap) * 3 // 4


def _vmem_bytes(tm, tn, feat, itemsize):
    """Estimated VMEM per grid step: double-buffered input tiles + f32 temps."""
    buffers = 2 * (tm + tn) * feat * itemsize       # pipeline double buffers
    temps = 4 * tm * tn * 4                         # logits / exp / iota / select temps
    scratch = 4 * tm * 128 * 4                      # (tm, 1) f32 scratch, lane padded
    out = 2 * 2 * 8 * 128 * 4
    return buffers + temps + scratch + out


def _pick_tiles(batch, feat, itemsize, budget):
    """VMEM-aware tile picker: prefer little zero-padding waste, then large row tiles
    (MXU height, step-count amortization), then as much of next_data resident as fits;
    smaller column tiles fall back to the online-logsumexp streaming path."""
    if batch <= 512:
        row_cands = [batch] + [t for t in (256, 128, 64, 32, 16, 8) if t < batch]
    else:
        row_cands = [512, 256, 128, 64, 32, 16, 8]
    if batch <= 4096:
        col_cands = [batch] + [t for t in (2048, 1024, 512, 256, 128, 64, 32, 16, 8)
                               if t < batch]
    else:
        col_cands = [4096, 2048, 1024, 512, 256, 128, 64, 32, 16, 8]

    def waste(t):                                    # fraction of zero-padded work
        return (_round_up(batch, t) - batch) / batch

    best, best_key = None, None
    for tm in row_cands:
        for tn in col_cands:
            if _vmem_bytes(tm, tn, feat, itemsize) > budget:
                continue
            key = (waste(tm) > 0.125, waste(tn) > 0.125, -tm, -tn)
            if best is None or key < best_key:
                best, best_key = (tm, tn), key
    if best is None:
        # TODO(synk): for extreme feature dims also block D (second reduction axis).
        best = (row_cands[-1], col_cands[-1])
    return best


def noise_con_loss(data, next_data, *, cast_to_bf16=True,
                   block_rows=None, block_cols=None):
    """Pallas TPU implementation of NoiseConLoss.forward.  Returns a scalar f32 loss."""
    assert data.ndim == 2 and data.shape == next_data.shape
    batch, feat = data.shape

    # bf16 inputs: 2x MXU rate and half the HBM/VMEM traffic on every generation;
    # accumulation and the logsumexp math stay in f32 inside the kernel.
    if cast_to_bf16 and data.dtype == jnp.float32:
        data = data.astype(jnp.bfloat16)
        next_data = next_data.astype(jnp.bfloat16)
    itemsize = jnp.dtype(data.dtype).itemsize

    budget = _vmem_budget_bytes()
    tm, tn = _pick_tiles(batch, feat, itemsize, budget)
    if block_rows is not None:
        tm = block_rows
    if block_cols is not None:
        tn = block_cols

    # Zero-pad to the tile grid; padding is masked out inside the kernel.
    rows_p = batch if tm == batch else _round_up(batch, tm)
    cols_p = batch if tn == batch else _round_up(batch, tn)
    if rows_p != batch:
        data = jnp.pad(data, ((0, rows_p - batch), (0, 0)))
    if cols_p != batch:
        next_data = jnp.pad(next_data, ((0, cols_p - batch), (0, 0)))

    ni_total = rows_p // tm
    nj = cols_p // tn
    # Megacore: split the row blocks into two "parallel" groups.  v7x runs one group
    # per TensorCore; v5e/v6e (1 TC) simply iterate both groups at no extra cost.
    num_groups = 2 if (ni_total >= 2 and ni_total % 2 == 0) else 1
    ni = ni_total // num_groups

    kernel = functools.partial(
        _noise_con_loss_kernel, batch=batch,
        mask_rows=(rows_p != batch), mask_cols=(cols_p != batch))

    cost = pl.CostEstimate(
        flops=2 * batch * batch * feat,
        transcendentals=batch * batch,
        bytes_accessed=(rows_p * feat * itemsize
                        + ni_total * cols_p * feat * itemsize
                        + num_groups * 8 * 128 * 4))

    out = pl.pallas_call(
        kernel,
        out_shape=jax.ShapeDtypeStruct((num_groups * 8, 128), jnp.float32),
        grid_spec=pltpu.PrefetchScalarGridSpec(
            num_scalar_prefetch=0,
            grid=(num_groups, ni, nj),
            in_specs=[
                # Row tiles of data: index fixed across the column axis, so each tile
                # is fetched once per row block (pipelined across row blocks).
                pl.BlockSpec((tm, feat), lambda p, i, j: (p * ni + i, 0)),
                # Column tiles of next_data: streamed along j; when tn == B the index
                # is constant, so it is DMA'd exactly once and stays resident.
                pl.BlockSpec((tn, feat), lambda p, i, j: (j, 0)),
            ],
            # One lane-dense (8, 128) partial-sum tile per row group / TensorCore.
            out_specs=pl.BlockSpec((8, 128), lambda p, i, j: (p, 0)),
            scratch_shapes=[pltpu.VMEM((tm, 1), jnp.float32) for _ in range(4)],
        ),
        compiler_params=pltpu.CompilerParams(
            dimension_semantics=("parallel", "arbitrary", "arbitrary"),
            vmem_limit_bytes=int(budget),
        ),
        cost_estimate=cost,
    )(data, next_data)

    partials = out[0::8, 0]                 # one partial sum per row group
    return jnp.sum(partials) / batch        # mean over the batch


def _reference(data, next_data):
    # Pure-JAX reference mirroring the PyTorch module (soft eye labels -> lse - diag).
    logits = (data[:, None, :] * next_data[None, :, :]).sum(-1)
    log_sm = jax.nn.log_softmax(logits, axis=-1)
    labels = jnp.eye(data.shape[0], dtype=logits.dtype)
    return jnp.mean(-jnp.sum(labels * log_sm, axis=-1))


def _check(batch, feat, key, **kwargs):
    k1, k2 = jax.random.split(key)
    data = jax.random.normal(k1, (batch, feat), dtype=jnp.float32)
    next_data = jax.random.normal(k2, (batch, feat), dtype=jnp.float32)
    loss = noise_con_loss(data, next_data, **kwargs)
    jax.block_until_ready(loss)
    # Reference computed on the same bf16-rounded inputs the kernel consumes.
    d_r = data.astype(jnp.bfloat16).astype(jnp.float32)
    n_r = next_data.astype(jnp.bfloat16).astype(jnp.float32)
    ref = _reference(d_r, n_r)
    assert jnp.allclose(loss, ref, rtol=1e-4, atol=1e-4), (batch, feat, loss, ref)
    return loss


if __name__ == "__main__":
    key = jax.random.PRNGKey(0)
    k0, k1, k2 = jax.random.split(key, 3)

    # Small representation batch / feature dim (single block, next_data resident).
    _check(8, 32, k0)
    # Multi-block path: online logsumexp over column blocks + megacore row-group split.
    _check(32, 64, k1, block_rows=8, block_cols=16)
    # Ragged batch: zero padding + in-kernel row/column masking.
    _check(20, 32, k2, block_rows=8, block_cols=8)

    print("KERNEL_OK")
</pallas_src>

<mosaic_0001>
module attributes {stable_mosaic.version = 11 : i64} {
  func.func @_noise_con_loss_kernel(%arg0: i32, %arg1: i32, %arg2: i32, %arg3: memref<8x32xbf16, #tpu.memory_space<vmem>>, %arg4: memref<8x32xbf16, #tpu.memory_space<vmem>>, %arg5: memref<8x128xf32, #tpu.memory_space<vmem>>, %arg6: memref<8x1xf32, #tpu.memory_space<vmem>>, %arg7: memref<8x1xf32, #tpu.memory_space<vmem>>, %arg8: memref<8x1xf32, #tpu.memory_space<vmem>>, %arg9: memref<8x1xf32, #tpu.memory_space<vmem>>) attributes {dimension_semantics = [#tpu.dimension_semantics<parallel>, #tpu.dimension_semantics<arbitrary>, #tpu.dimension_semantics<arbitrary>], iteration_bounds = array<i64: 1, 1, 1>, scalar_prefetch = 0 : i64, scratch_operands = 4 : i64, tpu.core_type = #tpu.core_type<tc>, window_params = [{transform_indices = @transform_0, window_bounds = array<i64: 8, 32>}, {transform_indices = @transform_1, window_bounds = array<i64: 8, 32>}, {transform_indices = @transform_2, window_bounds = array<i64: 8, 128>}]} {
    %c1_i32 = arith.constant 1 : i32
    %0 = arith.muli %arg0, %c1_i32 : i32
    %1 = arith.addi %0, %arg1 : i32
    %c8_i32 = arith.constant 8 : i32
    %2 = arith.muli %1, %c8_i32 : i32
    %c8_i32_0 = arith.constant 8 : i32
    %3 = arith.muli %arg2, %c8_i32_0 : i32
    %c0_i32 = arith.constant 0 : i32
    %4 = arith.cmpi eq, %arg1, %c0_i32 : i32
    %c0_i32_1 = arith.constant 0 : i32
    %5 = arith.cmpi eq, %arg2, %c0_i32_1 : i32
    %6 = arith.andi %4, %5 : i1
    %7 = arith.extui %6 : i1 to i32
    %c0_i32_2 = arith.constant 0 : i32
    %8 = arith.cmpi ne, %7, %c0_i32_2 : i32
    scf.if %8 {
      %cst_26 = arith.constant 0.000000e+00 : f32
      %49 = vector.broadcast %cst_26 : f32 to vector<8x1xf32>
      %c0_27 = arith.constant 0 : index
      %c0_28 = arith.constant 0 : index
      %50 = vector.load %arg9[%c0_27, %c0_28] : memref<8x1xf32, #tpu.memory_space<vmem>>, vector<8x1xf32>
      tpu.vector_store %arg9[%c0_27, %c0_28], %49 {strides = array<i32>} : memref<8x1xf32, #tpu.memory_space<vmem>>, vector<8x1xf32>,
      %cst_29 = arith.constant 0.000000e+00 : f32
      %51 = vector.broadcast %cst_29 : f32 to vector<8x128xf32>
      %c0_30 = arith.constant 0 : index
      %c0_31 = arith.constant 0 : index
      %52 = vector.load %arg5[%c0_30, %c0_31] : memref<8x128xf32, #tpu.memory_space<vmem>>, vector<8x128xf32>
      tpu.vector_store %arg5[%c0_30, %c0_31], %51 {strides = array<i32>} : memref<8x128xf32, #tpu.memory_space<vmem>>, vector<8x128xf32>,
    } else {
    }
    %c0_i32_3 = arith.constant 0 : i32
    %9 = arith.cmpi eq, %arg2, %c0_i32_3 : i32
    %10 = arith.extui %9 : i1 to i32
    %c0_i32_4 = arith.constant 0 : i32
    %11 = arith.cmpi ne, %10, %c0_i32_4 : i32
    scf.if %11 {
      %cst_26 = arith.constant 0xFF800000 : f32
      %49 = vector.broadcast %cst_26 : f32 to vector<8x1xf32>
      %c0_27 = arith.constant 0 : index
      %c0_28 = arith.constant 0 : index
      %50 = vector.load %arg6[%c0_27, %c0_28] : memref<8x1xf32, #tpu.memory_space<vmem>>, vector<8x1xf32>
      tpu.vector_store %arg6[%c0_27, %c0_28], %49 {strides = array<i32>} : memref<8x1xf32, #tpu.memory_space<vmem>>, vector<8x1xf32>,
      %cst_29 = arith.constant 0.000000e+00 : f32
      %51 = vector.broadcast %cst_29 : f32 to vector<8x1xf32>
      %c0_30 = arith.constant 0 : index
      %c0_31 = arith.constant 0 : index
      %52 = vector.load %arg7[%c0_30, %c0_31] : memref<8x1xf32, #tpu.memory_space<vmem>>, vector<8x1xf32>
      tpu.vector_store %arg7[%c0_30, %c0_31], %51 {strides = array<i32>} : memref<8x1xf32, #tpu.memory_space<vmem>>, vector<8x1xf32>,
      %cst_32 = arith.constant 0.000000e+00 : f32
      %53 = vector.broadcast %cst_32 : f32 to vector<8x1xf32>
      %c0_33 = arith.constant 0 : index
      %c0_34 = arith.constant 0 : index
      %54 = vector.load %arg8[%c0_33, %c0_34] : memref<8x1xf32, #tpu.memory_space<vmem>>, vector<8x1xf32>
      tpu.vector_store %arg8[%c0_33, %c0_34], %53 {strides = array<i32>} : memref<8x1xf32, #tpu.memory_space<vmem>>, vector<8x1xf32>,
    } else {
    }
    %c0 = arith.constant 0 : index
    %c0_5 = arith.constant 0 : index
    %12 = vector.load %arg3[%c0, %c0_5] : memref<8x32xbf16, #tpu.memory_space<vmem>>, vector<8x32xbf16>
    %c0_6 = arith.constant 0 : index
    %c0_7 = arith.constant 0 : index
    %13 = vector.load %arg4[%c0_6, %c0_7] : memref<8x32xbf16, #tpu.memory_space<vmem>>, vector<8x32xbf16>
    %cst = arith.constant dense<0.000000e+00> : vector<8x8xf32>
    %14 = tpu.matmul %12, %13, %cst {dimension_numbers = #tpu.dot_dimension_numbers<[1], [1], [0], [0], [0, 0, 1, 0], [], []>} : vector<8x32xbf16>, vector<8x32xbf16>, vector<8x8xf32> -> vector<8x8xf32>
    %15 = tpu.iota {dimensions = array<i32: 1>} : vector<8x8xi32>
    %16 = vector.broadcast %3 : i32 to vector<8x8xi32>
    %17 = arith.addi %16, %15 : vector<8x8xi32>
    %c0_8 = arith.constant 0 : index
    %c0_9 = arith.constant 0 : index
    %18 = vector.load %arg6[%c0_8, %c0_9] : memref<8x1xf32, #tpu.memory_space<vmem>>, vector<8x1xf32>
    %cst_10 = arith.constant dense<0xFF800000> : vector<8xf32>
    %19 = vector.multi_reduction <maximumf>, %14, %cst_10 [1] : vector<8x8xf32> to vector<8xf32>
    %20 = vector.shape_cast %19 : vector<8xf32> to vector<8x1xf32>
    %21 = arith.maximumf %18, %20 : vector<8x1xf32>
    %22 = arith.subf %18, %21 : vector<8x1xf32>
    %23 = math.exp %22 : vector<8x1xf32>
    %c0_11 = arith.constant 0 : index
    %c0_12 = arith.constant 0 : index
    %24 = vector.load %arg7[%c0_11, %c0_12] : memref<8x1xf32, #tpu.memory_space<vmem>>, vector<8x1xf32>
    %25 = arith.mulf %23, %24 : vector<8x1xf32>
    %26 = vector.broadcast %21 : vector<8x1xf32> to vector<8x8xf32>
    %27 = arith.subf %14, %26 : vector<8x8xf32>
    %28 = math.exp %27 : vector<8x8xf32>
    %cst_13 = arith.constant dense<0.000000e+00> : vector<8xf32>
    %29 = vector.multi_reduction <add>, %28, %cst_13 [1] : vector<8x8xf32> to vector<8xf32>
    %30 = vector.shape_cast %29 : vector<8xf32> to vector<8x1xf32>
    %31 = arith.addf %25, %30 : vector<8x1xf32>
    %c0_14 = arith.constant 0 : index
    %c0_15 = arith.constant 0 : index
    %32 = vector.load %arg7[%c0_14, %c0_15] : memref<8x1xf32, #tpu.memory_space<vmem>>, vector<8x1xf32>
    tpu.vector_store %arg7[%c0_14, %c0_15], %31 {strides = array<i32>} : memref<8x1xf32, #tpu.memory_space<vmem>>, vector<8x1xf32>,
    %c0_16 = arith.constant 0 : index
    %c0_17 = arith.constant 0 : index
    %33 = vector.load %arg6[%c0_16, %c0_17] : memref<8x1xf32, #tpu.memory_space<vmem>>, vector<8x1xf32>
    tpu.vector_store %arg6[%c0_16, %c0_17], %21 {strides = array<i32>} : memref<8x1xf32, #tpu.memory_space<vmem>>, vector<8x1xf32>,
    %c8_i32_18 = arith.constant 8 : i32
    %34 = arith.addi %2, %c8_i32_18 : i32
    %35 = arith.cmpi slt, %3, %34 : i32
    %c8_i32_19 = arith.constant 8 : i32
    %36 = arith.addi %3, %c8_i32_19 : i32
    %37 = arith.cmpi slt, %2, %36 : i32
    %38 = arith.andi %35, %37 : i1
    %39 = arith.extui %38 : i1 to i32
    %c0_i32_20 = arith.constant 0 : i32
    %40 = arith.cmpi ne, %39, %c0_i32_20 : i32
    scf.if %40 {
      %49 = tpu.iota {dimensions = array<i32: 0>} : vector<8x8xi32>
      %50 = vector.broadcast %2 : i32 to vector<8x8xi32>
      %51 = arith.addi %50, %49 : vector<8x8xi32>
      %c0_26 = arith.constant 0 : index
      %c0_27 = arith.constant 0 : index
      %52 = vector.load %arg8[%c0_26, %c0_27] : memref<8x1xf32, #tpu.memory_space<vmem>>, vector<8x1xf32>
      %53 = arith.cmpi eq, %51, %17 : vector<8x8xi32>
      %cst_28 = arith.constant 0.000000e+00 : f32
      %54 = vector.broadcast %cst_28 : f32 to vector<8x8xf32>
      %55 = arith.select %53, %14, %54 : vector<8x8xi1>, vector<8x8xf32>
      %cst_29 = arith.constant dense<0.000000e+00> : vector<8xf32>
      %56 = vector.multi_reduction <add>, %55, %cst_29 [1] : vector<8x8xf32> to vector<8xf32>
      %57 = vector.shape_cast %56 : vector<8xf32> to vector<8x1xf32>
      %58 = arith.addf %52, %57 : vector<8x1xf32>
      %c0_30 = arith.constant 0 : index
      %c0_31 = arith.constant 0 : index
      %59 = vector.load %arg8[%c0_30, %c0_31] : memref<8x1xf32, #tpu.memory_space<vmem>>, vector<8x1xf32>
      tpu.vector_store %arg8[%c0_30, %c0_31], %58 {strides = array<i32>} : memref<8x1xf32, #tpu.memory_space<vmem>>, vector<8x1xf32>,
    } else {
    }
    %c0_i32_21 = arith.constant 0 : i32
    %41 = arith.cmpi eq, %arg2, %c0_i32_21 : i32
    %42 = arith.extui %41 : i1 to i32
    %c0_i32_22 = arith.constant 0 : i32
    %43 = arith.cmpi ne, %42, %c0_i32_22 : i32
    scf.if %43 {
      %c0_26 = arith.constant 0 : index
      %c0_27 = arith.constant 0 : index
      %49 = vector.load %arg6[%c0_26, %c0_27] : memref<8x1xf32, #tpu.memory_space<vmem>>, vector<8x1xf32>
      %c0_28 = arith.constant 0 : index
      %c0_29 = arith.constant 0 : index
      %50 = vector.load %arg7[%c0_28, %c0_29] : memref<8x1xf32, #tpu.memory_space<vmem>>, vector<8x1xf32>
      %51 = math.log %50 : vector<8x1xf32>
      %52 = arith.addf %49, %51 : vector<8x1xf32>
      %c0_30 = arith.constant 0 : index
      %c0_31 = arith.constant 0 : index
      %53 = vector.load %arg8[%c0_30, %c0_31] : memref<8x1xf32, #tpu.memory_space<vmem>>, vector<8x1xf32>
      %54 = arith.subf %52, %53 : vector<8x1xf32>
      %c0_32 = arith.constant 0 : index
      %c0_33 = arith.constant 0 : index
      %55 = vector.load %arg9[%c0_32, %c0_33] : memref<8x1xf32, #tpu.memory_space<vmem>>, vector<8x1xf32>
      %56 = arith.addf %55, %54 : vector<8x1xf32>
      %c0_34 = arith.constant 0 : index
      %c0_35 = arith.constant 0 : index
      %57 = vector.load %arg9[%c0_34, %c0_35] : memref<8x1xf32, #tpu.memory_space<vmem>>, vector<8x1xf32>
      tpu.vector_store %arg9[%c0_34, %c0_35], %56 {strides = array<i32>} : memref<8x1xf32, #tpu.memory_space<vmem>>, vector<8x1xf32>,
    } else {
    }
    %c0_i32_23 = arith.constant 0 : i32
    %44 = arith.cmpi eq, %arg1, %c0_i32_23 : i32
    %c0_i32_24 = arith.constant 0 : i32
    %45 = arith.cmpi eq, %arg2, %c0_i32_24 : i32
    %46 = arith.andi %44, %45 : i1
    %47 = arith.extui %46 : i1 to i32
    %c0_i32_25 = arith.constant 0 : i32
    %48 = arith.cmpi ne, %47, %c0_i32_25 : i32
    scf.if %48 {
      %c0_26 = arith.constant 0 : index
      %c0_27 = arith.constant 0 : index
      %49 = vector.load %arg9[%c0_26, %c0_27] : memref<8x1xf32, #tpu.memory_space<vmem>>, vector<8x1xf32>
      %50 = vector.shape_cast %49 : vector<8x1xf32> to vector<1x8x1xf32>
      %cst_28 = arith.constant dense<0.000000e+00> : vector<1xf32>
      %51 = vector.multi_reduction <add>, %50, %cst_28 [1, 2] : vector<1x8x1xf32> to vector<1xf32>
      %52 = vector.shape_cast %51 : vector<1xf32> to vector<1x1x1xf32>
      %53 = vector.extract %52[0, 0, 0] : f32 from vector<1x1x1xf32>
      %cst_29 = arith.constant 0.000000e+00 : f32
      %54 = vector.broadcast %cst_29 : f32 to vector<8x128xf32>
      %55 = vector.broadcast %53 : f32 to vector<8x128xf32>
      %56 = arith.addf %55, %54 : vector<8x128xf32>
      %c0_30 = arith.constant 0 : index
      %c0_31 = arith.constant 0 : index
      %57 = vector.load %arg5[%c0_30, %c0_31] : memref<8x128xf32, #tpu.memory_space<vmem>>, vector<8x128xf32>
      tpu.vector_store %arg5[%c0_30, %c0_31], %56 {strides = array<i32>} : memref<8x128xf32, #tpu.memory_space<vmem>>, vector<8x128xf32>,
    } else {
    }
    return
  }
  func.func @transform_0(%arg0: i32, %arg1: i32, %arg2: i32) -> (i32, i32) {
    %c1_i32 = arith.constant 1 : i32
    %0 = arith.muli %arg0, %c1_i32 : i32
    %1 = arith.addi %0, %arg1 : i32
    %c0_i32 = arith.constant 0 : i32
    %c0_i32_0 = arith.constant 0 : i32
    return %1, %c0_i32 : i32, i32
  }
  func.func @transform_1(%arg0: i32, %arg1: i32, %arg2: i32) -> (i32, i32) {
    %c0_i32 = arith.constant 0 : i32
    %c0_i32_0 = arith.constant 0 : i32
    return %arg2, %c0_i32 : i32, i32
  }
  func.func @transform_2(%arg0: i32, %arg1: i32, %arg2: i32) -> (i32, i32) {
    %c0_i32 = arith.constant 0 : i32
    %c0_i32_0 = arith.constant 0 : i32
    return %arg0, %c0_i32 : i32, i32
  }
}

</mosaic_0001>

<bundles_post_ra>
// kernel: tpu_custom_call.1
= control target key start
LH: loop header
LB: loop body
LE: loop exit
PB: predicated region body
PF: predicated region fallthrough
CT: control target
= control target key end

     0   :  { %7 = vsyncpa [#allocation7], 0  ;;  %s371_s0 = inlined_call_operand.hbm [shape: bf16[8,32], index: 0, kind: input, shape index: {}]   ;;  %s372_s1 = inlined_call_operand.hbm [shape: bf16[8,32], index: 1, kind: input, shape index: {}]   ;;  %s373_s2 = inlined_call_operand.hbm [shape: f32[8,128], index: 2, kind: output, shape index: {}]  }
   0x1   :  { %8 = vsyncpa [#allocation10], 0 }
   0x2   :  { %9 = vsyncpa [#allocation8], 0  ;;  %s301_s9 = smov [#allocation6]   ;;  %s302_s11 = smov [#allocation9]  }
   0x3   :  { %s19_s10 = sshll.u32 %s301_s9, 4  ;;  %s29_s12 = sshll.u32 %s302_s11, 4  ;;  %s20_s10 = int_to_ptr.vmem [resolvable:$true] %s19_s10  ;;  %s30_s12 = int_to_ptr.vmem [resolvable:$true] %s29_s12 }
   0x4   :  { %s229_s15 = scalar_lea.hbm %s371_s0, 64 }
   0x5   :  { %p230_p0 = scmp.ne.s32.totalorder %s371_s0, %s229_s15  ;;  %p233_p1 = scmp.lt.u32.totalorder %s229_s15, %s371_s0 }
   0x7   :  { %p235_p2 = pnand %p233_p1, %p230_p0 }
   0x9   :  { %238 = shalt.err (!%p235_p2)
}
   0xa   :  { %s239_s20 = scalar_lea.vmem %s20_s10, 64  ;;  %p244_p4 = scmp.lt.s32.totalorder %s20_s10, %s20_s10 }
   0xb   :  { %p240_p3 = scmp.ne.s32.totalorder %s20_s10, %s239_s20  ;;  %p245_p5 = scmp.lt.s32.totalorder %s239_s20, %s239_s20 }
   0xd   :  { %p246_p6 = por %p245_p5, %p244_p4 }
   0xf   :  { %p247_p7 = pnand %p246_p6, %p240_p3 }
  0x11   :  { %250 = shalt.err (!%p247_p7)
}
  0x12   :  { %22 = dma.hbm_to_vmem [thread:$0]  %s371_s0, 64, %s20_s10, [#allocation7]  }
  0x13   :  { %s251_s25 = scalar_lea.hbm %s372_s1, 64 }
  0x14   :  { %p252_p8 = scmp.ne.s32.totalorder %s372_s1, %s251_s25  ;;  %p255_p9 = scmp.lt.u32.totalorder %s251_s25, %s372_s1 }
  0x16   :  { %p257_p10 = pnand %p255_p9, %p252_p8 }
  0x18   :  { %260 = shalt.err (!%p257_p10)
}
  0x19   :  { %s261_s30 = scalar_lea.vmem %s30_s12, 64  ;;  %p266_p12 = scmp.lt.s32.totalorder %s30_s12, %s30_s12 }
  0x1a   :  { %p262_p11 = scmp.ne.s32.totalorder %s30_s12, %s261_s30  ;;  %p267_p13 = scmp.lt.s32.totalorder %s261_s30, %s261_s30 }
  0x1c   :  { %p268_p0 = por %p267_p13, %p266_p12 }
  0x1e   :  { %p269_p1 = pnand %p268_p0, %p262_p11 }
  0x20   :  { %272 = shalt.err (!%p269_p1)
}
  0x21   :  { %32 = dma.hbm_to_vmem [thread:$0]  %s372_s1, 64, %s30_s12, [#allocation10]  }
  0x22   :  { %295 = dma.done.wait [#allocation7], 64  }
  0x23   :  { %296 = vsyncadd [#allocation7], 4294967232 }
  0x24   :  { %297 = dma.done.wait [#allocation10], 64  }
  0x25   :  { %298 = vsyncadd [#allocation10], 4294967232  ;;  %vm50_vm0 = vcmask 7168   ;;  %v303_v0 = vmov 0.0   ;;  %vm304_vm1 = vmmov 0   ;;  %vm62_vm2 = vcmask 261120  }
  0x26   :  { %51 = vst.msk [vmem:[#allocation5] sm:$0xff] %vm50_vm0, %v303_v0  ;;  %207 = vmatprep.subr.bf16.mxu0 %v303_v0  ;;  %58 = vst.msk [vmem:[#allocation3] sm:$0xff] %vm50_vm0, %v303_v0  ;;  %209 = vmatprep.mubr.msk.bf16.mxu0 %vm304_vm1, %v303_v0  ;;  %v61_v1 = vld [vmem:[#allocation9] sm:$0xf]  ;;  %v60_v3 = vld [vmem:[#allocation6] sm:$0xf]  ;;  %v109_v18 = vlaneseq }
  0x27   :  { %59 = vst.msk [vmem:[#allocation4] sm:$0xff] %vm50_vm0, %v303_v0  ;;  %v67_v2 = vsel %vm62_vm2, %v61_v1, 0  ;;  %v305_v4 = vmov -inf   ;;  %vm114_vm3 = vcmask 64512   ;;  %v306_v10 = vmov 0   ;;  %s307_s1 = smov [#allocation11]  }
  0x28   :  { %208 = vmatpush3.bf16.xpose.msra.mxu0 %v67_v2  ;;  %57 = vst.msk [vmem:[#allocation2] sm:$0xff] %vm50_vm0, %v305_v4  ;;  %222 = vset.pattern.permute.xlu0 %v306_v10  ;;  %v110_v19 = vand.u32 127, %v109_v18  ;;  %v148_v20 = vshrl.u32 %v109_v18, 7  ;;  %s194_s4 = sshll.u32 %s307_s1, 4  ;;  %s195_s4 = int_to_ptr.vmem [resolvable:$true] %s194_s4 }
  0x29   :  { %s273_s6 = scalar_lea.vmem %s195_s4, 128  ;;  %p278_p3 = scmp.lt.s32.totalorder %s195_s4, %s195_s4 }
  0x2a   :  { %vm152_vm4 = vcmp.eq.s32.totalorder %v148_v20, %v110_v19  ;;  %p274_p2 = scmp.ne.s32.totalorder %s195_s4, %s273_s6  ;;  %p279_p4 = scmp.lt.s32.totalorder %s273_s6, %s273_s6 }
  0x2c   :  { %p280_p5 = por %p279_p4, %p278_p3 }
  0x2d   :  { %v122_v27 = vld [vmem:[#allocation3] sm:$0xff]  ;;  %v169_v40 = vld [vmem:[#allocation5] sm:$0xff] }
  0x2e   :  { %v151_v31 = vld [vmem:[#allocation4] sm:$0xff]  ;;  %p281_p6 = pnand %p280_p5, %p274_p2 }
  0x2f   :  { %210 = vmatmul.mubr.msk.bf16.vlgmr.msra.gmra.mrb[0].mxu0 %vm62_vm2, %v60_v3  ;;  %v113_v11 = vld [vmem:[#allocation2] sm:$0xff] }
 0x102   :  { %v103_v5 = vpop.f32.mrb[0].mxu0 }
 0x103   :  { %v211_v6 = vpop.f32.mrb[1].mxu0  ;;  %v115_v7 = vsel %vm114_vm3, %v103_v5, -inf  ;;  %v153_v23 = vsel %vm152_vm4, %v103_v5, 0.0 }
 0x104   :  { %116 = vmax.xlane.f32.xlu0 %v115_v7  ;;  %v106_v8 = vpop.f32.mrb[2].mxu0  ;;  %v154_v24 = vsel %vm114_vm3, %v153_v23, 0.0 }
 0x105   :  { %v212_v9 = vpop.f32.mrb[3].mxu0 }
 0x191   :  { %v117_v12 = vpop.xlane.xlu0 %116 }
 0x192   :  { %v118_v13 = vmax.f32 %v113_v11, %v117_v12 }
 0x194   :  { %v119_v14 = vsub.f32 %v113_v11, %v118_v13  ;;  %138 = vst.msk [vmem:[#allocation2] sm:$0xff] %vm50_vm0, %v118_v13  ;;  %126 = vperm.xlu0 %222, %v118_v13  }
 0x196   :  { %v120_v25 = vmul.f32 1.442695, %v119_v14 }
 0x19b   :  { %v162_v37 = vld [vmem:[#allocation2] sm:$0xff] }
 0x213   :  { %v127_v15 = vpop.permute.xlu0 %126 }
 0x214   :  { %v129_v16 = vsub.f32 %v103_v5, %v127_v15 }
 0x216   :  { %v130_v17 = vmul.f32 1.442695, %v129_v16 }
 0x218   :  { %223 = vpow2.f32 %v130_v17 }
 0x219   :  { %225 = vpow2.f32 %v120_v25 }
 0x222   :  { %v224_v21 = vpop.eup %223 }
 0x223   :  { %v132_v22 = vsel %vm114_vm3, %v224_v21, 0.0  ;;  %v226_v26 = vpop.eup %225 }
 0x224   :  { %133 = vadd.xlane.f32.xlu1 %v132_v22  ;;  %v123_v28 = vmul.f32 %v226_v26, %v122_v27 }
 0x228   :  { %155 = vadd.xlane.f32.xlu1 %v154_v24 }
 0x2b1   :  { %v134_v29 = vpop.xlane.xlu1 %133 }
 0x2b2   :  { %v135_v30 = vadd.f32 %v134_v29, %v123_v28 }
 0x2b4   :  { %137 = vst.msk [vmem:[#allocation3] sm:$0xff] %vm50_vm0, %v135_v30 }
 0x2b5   :  { %v156_v32 = vpop.xlane.xlu1 %155 }
 0x2b6   :  { %v157_v33 = vadd.f32 %v156_v32, %v151_v31 }
 0x2b8   :  { %158 = vst.msk [vmem:[#allocation4] sm:$0xff] %vm50_vm0, %v157_v33 }
 0x2bb   :  { %v163_v34 = vld [vmem:[#allocation3] sm:$0xff] }
 0x2bc   :  { %227 = vlog2.f32 %v163_v34 }
 0x2bf   :  { %v167_v39 = vld [vmem:[#allocation4] sm:$0xff] }
 0x2c6   :  { %v228_v35 = vpop.eup %227 }
 0x2c7   :  { %v165_v36 = vmul.f32 0.6931472, %v228_v35 }
 0x2c9   :  { %v166_v38 = vadd.f32 %v165_v36, %v162_v37 }
 0x2cb   :  { %v168_v41 = vsub.f32 %v166_v38, %v167_v39 }
 0x2cd   :  { %v170_v42 = vadd.f32 %v169_v40, %v168_v41 }
 0x2cf   :  { %171 = vst.msk [vmem:[#allocation5] sm:$0xff] %vm50_vm0, %v170_v42 }
 0x2d6   :  { %v174_v43 = vld [vmem:[#allocation5] sm:$0xff] }
 0x2d7   :  { %v175_v44 = vsel %vm50_vm0, %v174_v43, 0.0 }
 0x2d8   :  { %176 = vadd.xlane.f32.xlu1 %v175_v44 }
 0x365   :  { %v177_v45 = vpop.xlane.xlu1 %176 }
 0x366   :  { %v178_v46 = vrot.slane %v177_v45, 4 }
 0x368   :  { %v179_v47 = vadd.f32 %v178_v46, %v177_v45 }
 0x36a   :  { %v180_v48 = vrot.slane %v179_v47, 2 }
 0x36c   :  { %v181_v49 = vadd.f32 %v180_v48, %v179_v47 }
 0x36e   :  { %v182_v50 = vrot.slane %v181_v49, 1 }
 0x370   :  { %v183_v51 = vadd.f32 %v182_v50, %v181_v49 }
 0x372   :  { %213 = vpush %v183_v51 }
 0x3a3   :  { %s214_s5 = spop %213 }
 0x3a4   :  { %v185_v52 = vstv %s214_s5 }
 0x3a5   :  { %187 = vst [vmem:[#allocation11] sm:$0xff] %v185_v52 }
 0x3a6   :  { %284 = shalt.err (!%p281_p6)
}
 0x3a7   :  { %s285_s9 = scalar_lea.hbm %s373_s2, 128 }
 0x3a8   :  { %p286_p7 = scmp.ne.s32.totalorder %s373_s2, %s285_s9  ;;  %p289_p8 = scmp.lt.u32.totalorder %s285_s9, %s373_s2 }
 0x3aa   :  { %p291_p9 = pnand %p289_p8, %p286_p7 }
 0x3ac   :  { %294 = shalt.err (!%p291_p9)
}
 0x3ad   :  { %197 = dma.vmem_to_hbm [thread:$0]  %s195_s4, 128, %s373_s2, [#allocation8]  }
 0x3ae   :  { %299 = dma.done.wait [#allocation8], 128  }
 0x3af   :  { %300 = vsyncadd [#allocation8], 4294967168 }
 0x3b0   :  { %201 = vsyncpa [#allocation7], 1 }
 0x3b1   :  { %202 = vsyncpa [#allocation10], 1 }
 0x3b2   :  { %203 = vsyncpa [#allocation8], 1 }

</bundles_post_ra>
